<compile_context>
chip_gen: v5e
topology: v5e:2x2
jax: 0.10.0
libtpu: 0.0.40
codegen_flags: <defaults>
</compile_context>

<pallas_src>
import functools

import jax
import jax.numpy as jnp
from jax import lax
from jax.experimental import pallas as pl
from jax.experimental.pallas import tpu as pltpu

LN_EPS = 1e-5


# ----------------------------------------------------------------------------- kernels
def proj_ln_kernel(x_ref, w_ref, b_ref, g_ref, beta_ref, o_ref):
    """y = LayerNorm(x @ W + b) * gamma + beta for one row tile (RT, D)."""
    x = x_ref[...].astype(w_ref.dtype)                                   # bf16 MXU lhs
    h = jnp.dot(x, w_ref[...], preferred_element_type=jnp.float32) + b_ref[...]
    # two-pass moments (avoids E[x^2]-E[x]^2 cancellation)
    mu = jnp.mean(h, axis=-1, keepdims=True)
    hc = h - mu
    var = jnp.mean(hc * hc, axis=-1, keepdims=True)
    y = hc * lax.rsqrt(var + LN_EPS)
    o_ref[...] = (y * g_ref[...] + beta_ref[...]).astype(o_ref.dtype)


def rankaware_attn_kernel(q_ref, kv_ref, wo_ref, bo_ref, o_ref,
                          m1_sc, l1_sc, v1_sc, vcat_sc, *, tj):
    """One (i, j-tile) grid step.

    q_ref : (H, Q, Dh)    bf16 resident (softmax scale pre-folded into the q LN affine)
    kv_ref: (B, H, P, Dh) bf16 resident whole kv tensor (indexed by i / j in-kernel)
    wo_ref: (D, D)        bf16 resident out_proj weight
    bo_ref: (1, D)        f32  out_proj bias
    o_ref : (TJ*Q, D)     bf16 rows for pairs i*B + jt*TJ .. i*B + jt*TJ + TJ - 1
    m1_sc/l1_sc: (H,Q,1) f32, v1_sc: (H,Q,Dh) f32 -- kv_i stats cached across jt
    vcat_sc: (TJ*Q, D) f32 head-major value slab feeding one out_proj matmul
    """
    i = pl.program_id(0)
    jt = pl.program_id(1)
    H, Q, Dh = q_ref.shape

    qh = q_ref[...]                                                       # (H, Q, Dh)

    # ---- kv_i statistics: computed once per i, cached across the jt axis ----------
    @pl.when(jt == 0)
    def _():
        kvi = kv_ref[i]                                                   # (H, P, Dh)
        s1 = jnp.einsum("hqd,hpd->hqp", qh, kvi,
                        preferred_element_type=jnp.float32)               # (H, Q, P)
        m1 = jnp.max(s1, axis=-1, keepdims=True)
        e1 = jnp.exp(s1 - m1)
        m1_sc[...] = m1
        l1_sc[...] = jnp.sum(e1, axis=-1, keepdims=True)
        v1_sc[...] = jnp.einsum("hqp,hpd->hqd", e1.astype(kvi.dtype), kvi,
                                preferred_element_type=jnp.float32)

    m1 = m1_sc[...]
    sum1 = l1_sc[...]
    v1 = v1_sc[...]

    # ---- j side: flash rescaling of the cached i-side stats -----------------------
    for t in range(tj):                                                   # static unroll
        j = jt * tj + t
        kvj = kv_ref[j]                                                   # (H, P, Dh)
        s2 = jnp.einsum("hqd,hpd->hqp", qh, kvj,
                        preferred_element_type=jnp.float32)               # (H, Q, P)
        m = jnp.maximum(m1, jnp.max(s2, axis=-1, keepdims=True))
        a = jnp.exp(m1 - m)                                               # (H, Q, 1)
        e2 = jnp.exp(s2 - m)
        denom = a * sum1 + jnp.sum(e2, axis=-1, keepdims=True)
        v2 = jnp.einsum("hqp,hpd->hqd", e2.astype(kvj.dtype), kvj,
                        preferred_element_type=jnp.float32)
        v = (a * v1 - v2) * pl.reciprocal(denom, approx=True)             # (H, Q, Dh)
        # head-major placement via static slices (no jnp.concatenate copies)
        for h in range(H):
            vcat_sc[t * Q:(t + 1) * Q, h * Dh:(h + 1) * Dh] = v[h]

    out = jnp.dot(vcat_sc[...].astype(wo_ref.dtype), wo_ref[...],
                  preferred_element_type=jnp.float32) + bo_ref[...]
    o_ref[...] = out.astype(o_ref.dtype)


# ----------------------------------------------------------------------------- wrappers
def _choose_tj(batch, q_tokens, row_cap=512):
    tj = 1
    for t in range(1, batch + 1):
        if batch % t == 0 and t * q_tokens <= row_cap:
            tj = t
    return tj


def proj_ln(x2d, w_bf16, b, gamma, beta, *, out_dtype=jnp.bfloat16, row_tile=512):
    """Fused Linear(D->D) + LayerNorm over flattened rows; returns (R, D) out_dtype."""
    R, D = x2d.shape
    if R <= row_tile:
        rt, Rp, xp = R, R, x2d
    else:
        rt = row_tile
        n_tiles = -(-R // rt)
        Rp = n_tiles * rt
        xp = jnp.pad(x2d, ((0, Rp - R), (0, 0))) if Rp != R else x2d
    out = pl.pallas_call(
        proj_ln_kernel,
        out_shape=jax.ShapeDtypeStruct((Rp, D), out_dtype),
        grid=(Rp // rt,),
        in_specs=[
            pl.BlockSpec((rt, D), lambda r: (r, 0)),
            pl.BlockSpec((D, D), lambda r: (0, 0)),       # resident weight (bf16)
            pl.BlockSpec((1, D), lambda r: (0, 0)),
            pl.BlockSpec((1, D), lambda r: (0, 0)),
            pl.BlockSpec((1, D), lambda r: (0, 0)),
        ],
        out_specs=pl.BlockSpec((rt, D), lambda r: (r, 0)),
        compiler_params=pltpu.CompilerParams(dimension_semantics=("parallel",)),
    )(xp, w_bf16, b, gamma, beta)
    return out[:R] if Rp != R else out


def _attn_pallas_call(q_heads, kv_heads, wo_bf16, bo, *, tj, nj, use_buffered):
    H, Q, Dh = q_heads.shape
    B, _, P, _ = kv_heads.shape
    D = H * Dh
    resident = dict(pipeline_mode=pl.Buffered(1)) if use_buffered else {}
    kernel = functools.partial(rankaware_attn_kernel, tj=tj)
    return pl.pallas_call(
        kernel,
        out_shape=jax.ShapeDtypeStruct((B * B * Q, D), jnp.bfloat16),
        grid=(B, nj),
        in_specs=[
            pl.BlockSpec((H, Q, Dh), lambda i, jt: (0, 0, 0), **resident),       # q
            pl.BlockSpec((B, H, P, Dh), lambda i, jt: (0, 0, 0, 0), **resident), # kv
            pl.BlockSpec((D, D), lambda i, jt: (0, 0), **resident),              # wo
            pl.BlockSpec((1, D), lambda i, jt: (0, 0), **resident),              # bo
        ],
        out_specs=pl.BlockSpec((tj * Q, D), lambda i, jt: (i * nj + jt, 0)),
        scratch_shapes=[
            pltpu.VMEM((H, Q, 1), jnp.float32),       # m1 cache
            pltpu.VMEM((H, Q, 1), jnp.float32),       # sum1 cache
            pltpu.VMEM((H, Q, Dh), jnp.float32),      # v1 cache
            pltpu.VMEM((tj * Q, D), jnp.float32),     # head-major value slab
        ],
        compiler_params=pltpu.CompilerParams(
            dimension_semantics=("parallel", "arbitrary"),
            vmem_limit_bytes=48 * 1024 * 1024),
    )(q_heads, kv_heads, wo_bf16, bo)


def rankaware_attention(q_heads, kv_heads, wo_bf16, bo, *, tj=None):
    H, Q, Dh = q_heads.shape
    B = kv_heads.shape[0]
    D = H * Dh
    if tj is None:
        tj = _choose_tj(B, Q)
    nj = B // tj
    try:
        out = _attn_pallas_call(q_heads, kv_heads, wo_bf16, bo,
                                tj=tj, nj=nj, use_buffered=True)
        out = jax.block_until_ready(out)
    except Exception:
        # TODO(synk): pl.Buffered(1) resident specs rejected by this jax/Mosaic build;
        # fall back to default double-buffered resident blocks (correctness identical).
        out = _attn_pallas_call(q_heads, kv_heads, wo_bf16, bo,
                                tj=tj, nj=nj, use_buffered=False)
    return out.reshape(B * B, Q, D)


def multi_head_rankaware_attention_v2(params, q_x, kv_x, *, num_heads):
    """Pallas forward. q_x: (1, Q, D) f32, kv_x: (B, P, D) f32 -> (B*B, Q, D) bf16."""
    _, Q, D = q_x.shape
    B, P, _ = kv_x.shape
    Dh = D // num_heads
    scale = Dh ** -0.5

    wq = params["wq"].astype(jnp.bfloat16)
    wkv = params["wkv"].astype(jnp.bfloat16)
    wo = params["wo"].astype(jnp.bfloat16)

    # fold the softmax scale into the q-side LN affine (exact): LN(xW+b)*(g*s) + beta*s
    gq_s = params["gq"] * scale
    betaq_s = params["betaq"] * scale

    q = proj_ln(q_x.reshape(Q, D), wq, params["bq"], gq_s, betaq_s)          # (Q, D) bf16
    kv = proj_ln(kv_x.reshape(B * P, D), wkv, params["bkv"],
                 params["gkv"], params["betakv"])                            # (B*P, D) bf16

    # head split (cheap for q; kv round trip still in XLA — see TODO at top of file)
    q_heads = q.reshape(Q, num_heads, Dh).transpose(1, 0, 2)                 # (H, Q, Dh)
    kv_heads = kv.reshape(B, P, num_heads, Dh).transpose(0, 2, 1, 3)         # (B, H, P, Dh)

    return rankaware_attention(q_heads, kv_heads, wo, params["bo"])


# ----------------------------------------------------------------------------- reference
def reference(params, q_x, kv_x, *, num_heads):
    def linear_ln(x, w, b, g, beta):
        h = x @ w + b
        mu = h.mean(-1, keepdims=True)
        var = ((h - mu) ** 2).mean(-1, keepdims=True)
        return (h - mu) / jnp.sqrt(var + LN_EPS) * g + beta

    q = linear_ln(q_x, params["wq"], params["bq"], params["gq"], params["betaq"])
    kv = linear_ln(kv_x, params["wkv"], params["bkv"], params["gkv"], params["betakv"])
    B, P, D = kv.shape
    Q = q.shape[1]
    Dh = D // num_heads
    qh = q.reshape(1, Q, num_heads, Dh).transpose(0, 2, 1, 3)
    kvh = kv.reshape(B, P, num_heads, Dh).transpose(0, 2, 1, 3)
    qh = jnp.broadcast_to(qh, (B * B, num_heads, Q, Dh))
    kv_rep = jnp.repeat(kvh, B, axis=0)
    kv_til = jnp.tile(kvh, (B, 1, 1, 1))
    kvc = jnp.concatenate([kv_rep, kv_til], axis=2)
    scale = Dh ** -0.5
    s = jnp.einsum("bnqd,bnpd->bnqp", qh, kvc) * scale
    att = jax.nn.softmax(s, axis=-1)
    a1, a2 = att[..., :P], att[..., P:]
    v = (jnp.einsum("bnqp,bnpd->bnqd", a1, kvc[:, :, :P]) -
         jnp.einsum("bnqp,bnpd->bnqd", a2, kvc[:, :, P:]))
    v = v.transpose(0, 2, 1, 3).reshape(B * B, Q, D)
    return v @ params["wo"] + params["bo"]


# ----------------------------------------------------------------------------- main
if __name__ == "__main__":
    d_model, num_heads = 32, 4
    batch, n_query_tokens, n_patch_tokens = 2, 8, 16

    key = jax.random.PRNGKey(0)
    ks = jax.random.split(key, 12)

    def w_init(k):
        return jax.random.normal(k, (d_model, d_model), jnp.float32) * 0.05

    params = {
        "wq": w_init(ks[0]),
        "bq": jax.random.normal(ks[1], (1, d_model), jnp.float32) * 0.02,
        "gq": 1.0 + jax.random.normal(ks[2], (1, d_model), jnp.float32) * 0.1,
        "betaq": jax.random.normal(ks[3], (1, d_model), jnp.float32) * 0.1,
        "wkv": w_init(ks[4]),
        "bkv": jax.random.normal(ks[5], (1, d_model), jnp.float32) * 0.02,
        "gkv": 1.0 + jax.random.normal(ks[6], (1, d_model), jnp.float32) * 0.1,
        "betakv": jax.random.normal(ks[7], (1, d_model), jnp.float32) * 0.1,
        "wo": w_init(ks[8]),
        "bo": jax.random.normal(ks[9], (1, d_model), jnp.float32) * 0.02,
    }

    q_x = jax.random.normal(ks[10], (1, n_query_tokens, d_model), jnp.float32)
    kv_x = jax.random.normal(ks[11], (batch, n_patch_tokens, d_model), jnp.float32)

    out = multi_head_rankaware_attention_v2(params, q_x, kv_x, num_heads=num_heads)
    out = jax.block_until_ready(out)

    ref = jax.block_until_ready(reference(params, q_x, kv_x, num_heads=num_heads))
    assert out.shape == (batch * batch, n_query_tokens, d_model), out.shape
    # bf16 MXU inputs + bf16 output storage (per perf review) -> looser tolerance
    # than a pure-f32 path.
    err = float(jnp.abs(out.astype(jnp.float32) - ref).max())
    assert jnp.allclose(out.astype(jnp.float32), ref, atol=7e-2, rtol=7e-2), err

    print("KERNEL_OK")
</pallas_src>

<mosaic_0001>
module attributes {stable_mosaic.version = 11 : i64} {
  func.func @proj_ln_kernel(%arg0: i32, %arg1: memref<8x32xf32, #tpu.memory_space<vmem>>, %arg2: memref<32x32xbf16, #tpu.memory_space<vmem>>, %arg3: memref<1x32xf32, #tpu.memory_space<vmem>>, %arg4: memref<1x32xf32, #tpu.memory_space<vmem>>, %arg5: memref<1x32xf32, #tpu.memory_space<vmem>>, %arg6: memref<8x32xbf16, #tpu.memory_space<vmem>>) attributes {dimension_semantics = [#tpu.dimension_semantics<parallel>], iteration_bounds = array<i64: 1>, scalar_prefetch = 0 : i64, scratch_operands = 0 : i64, tpu.core_type = #tpu.core_type<tc>, window_params = [{transform_indices = @transform_0, window_bounds = array<i64: 8, 32>}, {pipeline_mode = #tpu.pipeline_mode<synchronous>, transform_indices = @transform_1, window_bounds = array<i64: 32, 32>}, {pipeline_mode = #tpu.pipeline_mode<synchronous>, transform_indices = @transform_2, window_bounds = array<i64: 1, 32>}, {pipeline_mode = #tpu.pipeline_mode<synchronous>, transform_indices = @transform_3, window_bounds = array<i64: 1, 32>}, {pipeline_mode = #tpu.pipeline_mode<synchronous>, transform_indices = @transform_4, window_bounds = array<i64: 1, 32>}, {transform_indices = @transform_5, window_bounds = array<i64: 8, 32>}]} {
    %c0 = arith.constant 0 : index
    %c0_0 = arith.constant 0 : index
    %0 = vector.load %arg1[%c0, %c0_0] : memref<8x32xf32, #tpu.memory_space<vmem>>, vector<8x32xf32>
    %1 = arith.truncf %0 : vector<8x32xf32> to vector<8x32xbf16>
    %c0_1 = arith.constant 0 : index
    %c0_2 = arith.constant 0 : index
    %2 = vector.load %arg2[%c0_1, %c0_2] : memref<32x32xbf16, #tpu.memory_space<vmem>>, vector<32x32xbf16>
    %cst = arith.constant dense<0.000000e+00> : vector<8x32xf32>
    %3 = tpu.matmul %1, %2, %cst {dimension_numbers = #tpu.dot_dimension_numbers<[1], [0], [0], [1], [0, 0, 1, 1], [], []>} : vector<8x32xbf16>, vector<32x32xbf16>, vector<8x32xf32> -> vector<8x32xf32>
    %c0_3 = arith.constant 0 : index
    %c0_4 = arith.constant 0 : index
    %4 = vector.load %arg3[%c0_3, %c0_4] : memref<1x32xf32, #tpu.memory_space<vmem>>, vector<1x32xf32>
    %5 = vector.broadcast %4 : vector<1x32xf32> to vector<8x32xf32>
    %6 = arith.addf %3, %5 : vector<8x32xf32>
    %cst_5 = arith.constant dense<0.000000e+00> : vector<8xf32>
    %7 = vector.multi_reduction <add>, %6, %cst_5 [1] : vector<8x32xf32> to vector<8xf32>
    %8 = vector.shape_cast %7 : vector<8xf32> to vector<8x1xf32>
    %cst_6 = arith.constant 3.200000e+01 : f32
    %9 = vector.broadcast %cst_6 : f32 to vector<8x1xf32>
    %10 = arith.divf %8, %9 : vector<8x1xf32>
    %11 = vector.broadcast %10 : vector<8x1xf32> to vector<8x32xf32>
    %12 = arith.subf %6, %11 : vector<8x32xf32>
    %13 = arith.mulf %12, %12 : vector<8x32xf32>
    %cst_7 = arith.constant dense<0.000000e+00> : vector<8xf32>
    %14 = vector.multi_reduction <add>, %13, %cst_7 [1] : vector<8x32xf32> to vector<8xf32>
    %15 = vector.shape_cast %14 : vector<8xf32> to vector<8x1xf32>
    %cst_8 = arith.constant 3.200000e+01 : f32
    %16 = vector.broadcast %cst_8 : f32 to vector<8x1xf32>
    %17 = arith.divf %15, %16 : vector<8x1xf32>
    %cst_9 = arith.constant 9.99999974E-6 : f32
    %18 = vector.broadcast %cst_9 : f32 to vector<8x1xf32>
    %19 = arith.addf %17, %18 : vector<8x1xf32>
    %20 = math.rsqrt %19 : vector<8x1xf32>
    %21 = vector.broadcast %20 : vector<8x1xf32> to vector<8x32xf32>
    %22 = arith.mulf %12, %21 : vector<8x32xf32>
    %c0_10 = arith.constant 0 : index
    %c0_11 = arith.constant 0 : index
    %23 = vector.load %arg4[%c0_10, %c0_11] : memref<1x32xf32, #tpu.memory_space<vmem>>, vector<1x32xf32>
    %24 = vector.broadcast %23 : vector<1x32xf32> to vector<8x32xf32>
    %25 = arith.mulf %22, %24 : vector<8x32xf32>
    %c0_12 = arith.constant 0 : index
    %c0_13 = arith.constant 0 : index
    %26 = vector.load %arg5[%c0_12, %c0_13] : memref<1x32xf32, #tpu.memory_space<vmem>>, vector<1x32xf32>
    %27 = vector.broadcast %26 : vector<1x32xf32> to vector<8x32xf32>
    %28 = arith.addf %25, %27 : vector<8x32xf32>
    %29 = arith.truncf %28 : vector<8x32xf32> to vector<8x32xbf16>
    %c0_14 = arith.constant 0 : index
    %c0_15 = arith.constant 0 : index
    %30 = vector.load %arg6[%c0_14, %c0_15] : memref<8x32xbf16, #tpu.memory_space<vmem>>, vector<8x32xbf16>
    tpu.vector_store %arg6[%c0_14, %c0_15], %29 {strides = array<i32>} : memref<8x32xbf16, #tpu.memory_space<vmem>>, vector<8x32xbf16>,
    return
  }
  func.func @transform_0(%arg0: i32) -> (i32, i32) {
    %c0_i32 = arith.constant 0 : i32
    %c0_i32_0 = arith.constant 0 : i32
    return %arg0, %c0_i32 : i32, i32
  }
  func.func @transform_1(%arg0: i32) -> (i32, i32) {
    %c0_i32 = arith.constant 0 : i32
    %c0_i32_0 = arith.constant 0 : i32
    %c0_i32_1 = arith.constant 0 : i32
    return %c0_i32, %c0_i32_0 : i32, i32
  }
  func.func @transform_2(%arg0: i32) -> (i32, i32) {
    %c0_i32 = arith.constant 0 : i32
    %c0_i32_0 = arith.constant 0 : i32
    %c0_i32_1 = arith.constant 0 : i32
    return %c0_i32, %c0_i32_0 : i32, i32
  }
  func.func @transform_3(%arg0: i32) -> (i32, i32) {
    %c0_i32 = arith.constant 0 : i32
    %c0_i32_0 = arith.constant 0 : i32
    %c0_i32_1 = arith.constant 0 : i32
    return %c0_i32, %c0_i32_0 : i32, i32
  }
  func.func @transform_4(%arg0: i32) -> (i32, i32) {
    %c0_i32 = arith.constant 0 : i32
    %c0_i32_0 = arith.constant 0 : i32
    %c0_i32_1 = arith.constant 0 : i32
    return %c0_i32, %c0_i32_0 : i32, i32
  }
  func.func @transform_5(%arg0: i32) -> (i32, i32) {
    %c0_i32 = arith.constant 0 : i32
    %c0_i32_0 = arith.constant 0 : i32
    return %arg0, %c0_i32 : i32, i32
  }
}

</mosaic_0001>

<bundles_post_ra>
// kernel: tpu_custom_call.1
= control target key start
LH: loop header
LB: loop body
LE: loop exit
PB: predicated region body
PF: predicated region fallthrough
CT: control target
= control target key end

     0   :  { %10 = vsyncpa [#allocation3], 0  ;;  %s310_s0 = inlined_call_operand.hbm [shape: f32[8,32], index: 0, kind: input, shape index: {}]   ;;  %s311_s1 = inlined_call_operand.hbm [shape: bf16[32,32], index: 1, kind: input, shape index: {}]   ;;  %s312_s2 = inlined_call_operand.vmem [shape: f32[1,32], index: 2, kind: input, shape index: {}]   ;;  %s313_s3 = inlined_call_operand.vmem [shape: f32[1,32], index: 3, kind: input, shape index: {}]   ;;  %s314_s4 = inlined_call_operand.vmem [shape: f32[1,32], index: 4, kind: input, shape index: {}]   ;;  %s315_s5 = inlined_call_operand.hbm [shape: bf16[8,32], index: 5, kind: output, shape index: {}]  }
   0x1   :  { %11 = vsyncpa [#allocation6], 0 }
   0x2   :  { %12 = vsyncpa [#allocation4], 0  ;;  %s18_s20 = sshll.u32 %s310_s0, 4  ;;  %s253_s21 = smov [#allocation2]   ;;  %s19_s20 = int_to_ptr.hbm [resolvable:$true] %s18_s20 }
   0x3   :  { %s20_s22 = sshll.u32 %s253_s21, 4  ;;  %s28_s25 = sshll.u32 %s311_s1, 4  ;;  %s21_s22 = int_to_ptr.vmem [resolvable:$true] %s20_s22  ;;  %s29_s25 = int_to_ptr.hbm [resolvable:$true] %s28_s25 }
   0x4   :  { %23 = dma.hbm_to_vmem [thread:$0]  %s19_s20, 128, %s21_s22, [#allocation3]  }
   0x5   :  { %s254_s26 = smov [#allocation5]   ;;  %s255_s28 = smov 64  }
   0x6   :  { %s30_s27 = sshll.u32 %s254_s26, 4  ;;  %s256_s29 = smov 4   ;;  %s31_s27 = int_to_ptr.vmem [resolvable:$true] %s30_s27 }
   0x7   :  { %36 = dma.hbm_to_vmem [thread:$0]  %s29_s25, 256, %s31_s27, [#allocation6], %s255_s28, %s255_s28, %s256_s29  }
   0x8   :  { %247 = dma.done.wait [#allocation3], 128  }
   0x9   :  { %248 = vsyncadd [#allocation3], 4294967168 }
   0xa   :  { %249 = dma.done.wait [#allocation6], 256  }
   0xb   :  { %250 = vsyncadd [#allocation6], 4294967040  ;;  %v161_v0 = vld [vmem:[#allocation5 + $0x8] sm:$0xff]  ;;  %v160_v1 = vld [vmem:[#allocation5] sm:$0xff]  ;;  %vm74_vm0 = vcmask 261120   ;;  %v257_v9 = vmov 32.0  }
   0xc   :  { %84 = vmatpush.bf16.msra.mxu0 %v161_v0  ;;  %v52_v2 = vld [vmem:[#allocation2] sm:$0xff]  ;;  %171 = vrcp.f32 %v257_v9  ;;  %s258_s8 = smov [#allocation7]   ;;  %s140_s12 = sshll.u32 %s315_s5, 4  ;;  %vm131_vm5 = vcmask 257024   ;;  %s141_s12 = int_to_ptr.hbm [resolvable:$true] %s140_s12 }
   0xd   :  { %v53_v3 = vpack.c.bf16 %v52_v2, %v52_v2  ;;  %v168_v4 = vld [vmem:[%s312_s2] ss:$0 sm:$0xff]  ;;  %s138_s9 = sshll.u32 %s258_s8, 4  ;;  %s139_s9 = int_to_ptr.vmem [resolvable:$true] %s138_s9 }
   0xe   :  { %v169_v30 = vld [vmem:[%s313_s3] ss:$0 sm:$0xff] }
   0xf   :  { %v170_v33 = vld [vmem:[%s314_s4] ss:$0 sm:$0xff] }
  0x10   :  { %85 = vmatpush.bf16.msra.mxu0 %v160_v1 }
  0x12   :  { %v172_v10 = vpop.eup %171 }
  0x13   :  { %159 = vmatmul.msk.bf16.vlgmr.msra.gmra.mxu0 %vm74_vm0, %v53_v3  ;;  %v95_v11 = vmul.f32 32.0, %v172_v10  ;;  %vm99_vm1 = vweird.f32 %v172_v10 }
  0x15   :  { %v96_v12 = vsub.f32 1.0, %v95_v11 }
  0x17   :  { %v97_v13 = vmul.f32 %v172_v10, %v96_v12 }
  0x19   :  { %v98_v14 = vadd.f32 %v172_v10, %v97_v13 }
  0x1b   :  { %v100_v15 = vsel %vm99_vm1, %v172_v10, %v98_v14 }
  0x90   :  { %v87_v5 = vpop.f32.mrf.mxu0 }
  0x91   :  { %v88_v6 = vadd.f32 %v168_v4, %v87_v5 }
  0x93   :  { %v91_v7 = vsel %vm74_vm0, %v88_v6, 0.0 }
  0x94   :  { %92 = vadd.xlane.f32.xlu0 %v91_v7 }
  0x98   :  { %v89_v8 = vpop.f32.mrf.mxu0 }
 0x107   :  { %v93_v16 = vpop.xlane.xlu0 %92 }
 0x108   :  { %v101_v17 = vmul.f32 %v100_v15, %v93_v16 }
 0x10a   :  { %v102_v18 = vsub.f32 %v88_v6, %v101_v17 }
 0x10c   :  { %v103_v19 = vmul.f32 %v102_v18, %v102_v18 }
 0x10e   :  { %v104_v20 = vsel %vm74_vm0, %v103_v19, 0.0 }
 0x10f   :  { %105 = vadd.xlane.f32.xlu0 %v104_v20 }
 0x182   :  { %v106_v21 = vpop.xlane.xlu0 %105 }
 0x183   :  { %v107_v22 = vmul.f32 %v106_v21, %v100_v15 }
 0x185   :  { %v108_v23 = vadd.f32 1e-05, %v107_v22 }
 0x187   :  { %173 = vrsqrt.f32 %v108_v23  ;;  %vm115_vm3 = vweird.f32 %v108_v23 }
 0x18d   :  { %v174_v24 = vpop.eup %173 }
 0x18e   :  { %v110_v25 = vmul.f32 %v174_v24, %v108_v23  ;;  %vm116_vm2 = vweird.f32 %v174_v24 }
 0x18f   :  { %vm117_vm4 = vmor %vm115_vm3, %vm116_vm2 }
 0x190   :  { %v111_v26 = vmul.f32 %v174_v24, %v110_v25 }
 0x192   :  { %v112_v27 = vmul.f32 0.5, %v111_v26 }
 0x194   :  { %v113_v28 = vsub.f32 1.5, %v112_v27 }
 0x196   :  { %v114_v29 = vmul.f32 %v174_v24, %v113_v28 }
 0x198   :  { %v118_v31 = vsel %vm117_vm4, %v174_v24, %v114_v29 }
 0x199   :  { %v119_v32 = vmul.f32 %v118_v31, %v102_v18 }
 0x19b   :  { %v124_v34 = vmul.f32 %v169_v30, %v119_v32 }
 0x19d   :  { %v129_v35 = vadd.f32 %v170_v33, %v124_v34 }
 0x19f   :  { %v130_v36 = vpack.c.bf16 %v129_v35, %v129_v35 }
 0x1a1   :  { %132 = vst.msk [vmem:[#allocation7] sm:$0xf] %vm131_vm5, %v130_v36 }
 0x1a2   :  { %143 = dma.vmem_to_hbm [thread:$0]  %s139_s9, 64, %s141_s12, [#allocation4]  }
 0x1a3   :  { %251 = dma.done.wait [#allocation4], 64  }
 0x1a4   :  { %252 = vsyncadd [#allocation4], 4294967232 }
 0x1a5   :  { %148 = vsyncpa [#allocation3], 1 }
 0x1a6   :  { %149 = vsyncpa [#allocation6], 1 }
 0x1a7   :  { %150 = vsyncpa [#allocation4], 1 }

</bundles_post_ra>
